<compile_context>
chip_gen: v5e
topology: v5e:2x2
jax: 0.10.0
libtpu: 0.0.40
codegen_flags: <defaults>
</compile_context>

<pallas_src>
import math
import jax
import jax.numpy as jnp
from jax.experimental import pallas as pl
from jax.experimental.pallas import tpu as pltpu


def _round_up(x, m):
    return (x + m - 1) // m * m


def _expert_linear_kernel(x_ref, w_ref, b_ref, o_ref, acc_ref):
    # x_ref: (tm, tk), w_ref: (tk, tn), b_ref: (1, tn), o_ref: (tm, tn), acc_ref: (tm, tn) f32
    k = pl.program_id(3)

    @pl.when(k == 0)
    def _():
        acc_ref[...] = jnp.zeros_like(acc_ref)

    acc_ref[...] += jnp.dot(x_ref[...], w_ref[...],
                            preferred_element_type=jnp.float32)

    @pl.when(k == pl.num_programs(3) - 1)
    def _():
        # Bias add + cast only once per output tile (not once per K step).
        o_ref[...] = (acc_ref[...] + b_ref[...].astype(jnp.float32)).astype(o_ref.dtype)


def distributed_expert_allgather_forward(x, weight, bias, *,
                                         compute_dtype=None,
                                         tm_target=256, tn_target=256, tk_target=512):
    """x: [E, C, S, M], weight: [E, M, N], bias: [E, 1, N] -> y: [E, C, S, N].

    compute_dtype: optionally cast x / weight (e.g. jnp.bfloat16) to feed the MXU at
    full rate on v6e/v7x; accumulation stays f32 either way.
    """
    E, C, S, M = x.shape
    _, _, N = weight.shape
    CS = C * S

    if compute_dtype is not None:
        x = x.astype(compute_dtype)
        weight = weight.astype(compute_dtype)
    out_dtype = x.dtype

    # einops.rearrange 'e c s m -> e (c s) m' (glue, plain JAX)
    x_flat = x.reshape(E, CS, M)

    # Tile sizes: sublane dim multiple of 8, lane dims multiple of 128 (lane-dense stores).
    tm = min(tm_target, _round_up(CS, 8))
    tn = min(tn_target, _round_up(N, 128))
    tk = min(tk_target, _round_up(M, 128))

    CS_p = _round_up(CS, tm)
    N_p = _round_up(N, tn)
    M_p = _round_up(M, tk)

    # Zero-pad ragged edges (zero K-padding contributes nothing; padded rows/cols sliced off).
    if (CS_p, M_p) != (CS, M):
        x_flat = jnp.pad(x_flat, ((0, 0), (0, CS_p - CS), (0, M_p - M)))
    w_p = weight
    if (M_p, N_p) != (M, N):
        w_p = jnp.pad(weight, ((0, 0), (0, M_p - M), (0, N_p - N)))
    b_p = bias
    if N_p != N:
        b_p = jnp.pad(bias, ((0, 0), (0, 0), (0, N_p - N)))

    # Grid: (E, CS tiles, N tiles, K tiles) -- reduction axis innermost; CS tiles right after
    # E so each (small) weight tile is reused across full K sweeps.
    grid = (E, CS_p // tm, N_p // tn, M_p // tk)

    grid_spec = pltpu.PrefetchScalarGridSpec(
        num_scalar_prefetch=0,
        grid=grid,
        in_specs=[
            pl.BlockSpec((pl.Squeezed(), tm, tk), lambda e, i, j, k: (e, i, k)),
            pl.BlockSpec((pl.Squeezed(), tk, tn), lambda e, i, j, k: (e, k, j)),
            pl.BlockSpec((pl.Squeezed(), 1, tn), lambda e, i, j, k: (e, 0, j)),
        ],
        out_specs=pl.BlockSpec((pl.Squeezed(), tm, tn), lambda e, i, j, k: (e, i, j)),
        scratch_shapes=[pltpu.VMEM((tm, tn), jnp.float32)],
    )

    bytes_accessed = (
        x_flat.size * x_flat.dtype.itemsize
        + w_p.size * w_p.dtype.itemsize
        + b_p.size * b_p.dtype.itemsize
        + E * CS_p * N_p * jnp.dtype(out_dtype).itemsize)
    cost = pl.CostEstimate(flops=2 * E * CS * M * N,
                           transcendentals=0,
                           bytes_accessed=bytes_accessed)

    y_flat = pl.pallas_call(
        _expert_linear_kernel,
        out_shape=jax.ShapeDtypeStruct((E, CS_p, N_p), out_dtype),
        grid_spec=grid_spec,
        compiler_params=pltpu.CompilerParams(
            dimension_semantics=("parallel", "parallel", "parallel", "arbitrary"),
            vmem_limit_bytes=32 * 1024 * 1024),
        cost_estimate=cost,
    )(x_flat, w_p, b_p)

    # Drop padding, then einops.rearrange 'e (c s) n -> e c s n' (glue)
    y_flat = y_flat[:, :CS, :N]
    return y_flat.reshape(E, C, S, N)


def init_params(key, num_experts, in_features, out_features, dtype=jnp.float32):
    """Deterministic init matching reset_parameters():
       kaiming_uniform_(a=sqrt(5)) on a [E, in, out] tensor -> bound = gain*sqrt(3/fan_in),
       with fan_in = in_features * out_features (PyTorch fan rule for 3D tensors).
       bias ~ U(-1/sqrt(fan_in), 1/sqrt(fan_in))."""
    kw, kb = jax.random.split(key)
    fan_in = in_features * out_features
    gain = math.sqrt(2.0 / (1.0 + 5.0))           # a = sqrt(5)
    w_bound = gain * math.sqrt(3.0 / fan_in)
    b_bound = 1.0 / math.sqrt(fan_in)
    weight = jax.random.uniform(
        kw, (num_experts, in_features, out_features), dtype,
        minval=-w_bound, maxval=w_bound)
    bias = jax.random.uniform(
        kb, (num_experts, 1, out_features), dtype,
        minval=-b_bound, maxval=b_bound)
    return weight, bias


if __name__ == "__main__":
    key = jax.random.PRNGKey(0)
    kx, kp = jax.random.split(key)

    # Small shapes consistent with the module's [expert, capacity, seq, feature] input.
    E, C, S = 2, 4, 8
    in_features, out_features = 32, 64

    x = jax.random.normal(kx, (E, C, S, in_features), dtype=jnp.float32)
    weight, bias = init_params(kp, E, in_features, out_features)

    # f32 path (exact reference check).
    y = distributed_expert_allgather_forward(x, weight, bias)
    y = jax.block_until_ready(y)

    # Reference (plain JAX) of the einsum + bias semantics.
    x_flat = x.reshape(E, C * S, in_features)
    w_t = jnp.transpose(weight, (0, 2, 1))                       # 'e n m'
    y_ref = jnp.einsum('ecm,enm->ecn', x_flat, w_t) + bias       # [E, CS, N]
    y_ref = y_ref.reshape(E, C, S, out_features)
    assert y.shape == (E, C, S, out_features)
    assert jnp.allclose(y, y_ref, atol=1e-5, rtol=1e-5)

    # bf16 MXU path (v6e/v7x-preferred operand dtype), looser tolerance.
    y_bf16 = distributed_expert_allgather_forward(
        x, weight, bias, compute_dtype=jnp.bfloat16)
    y_bf16 = jax.block_until_ready(y_bf16)
    assert jnp.allclose(y_bf16.astype(jnp.float32), y_ref, atol=5e-2, rtol=5e-2)

    print("KERNEL_OK")
</pallas_src>

<mosaic_0001>
module attributes {stable_mosaic.version = 11 : i64} {
  func.func @_expert_linear_kernel(%arg0: i32, %arg1: i32, %arg2: i32, %arg3: i32, %arg4: memref<1x32x128xf32, #tpu.memory_space<vmem>>, %arg5: memref<1x128x128xf32, #tpu.memory_space<vmem>>, %arg6: memref<1x1x128xf32, #tpu.memory_space<vmem>>, %arg7: memref<1x32x128xf32, #tpu.memory_space<vmem>>, %arg8: memref<32x128xf32, #tpu.memory_space<vmem>>) attributes {dimension_semantics = [#tpu.dimension_semantics<parallel>, #tpu.dimension_semantics<parallel>, #tpu.dimension_semantics<parallel>, #tpu.dimension_semantics<arbitrary>], iteration_bounds = array<i64: 2, 1, 1, 1>, scalar_prefetch = 0 : i64, scratch_operands = 1 : i64, tpu.core_type = #tpu.core_type<tc>, window_params = [{transform_indices = @transform_0, window_bounds = array<i64: 1, 32, 128>}, {transform_indices = @transform_1, window_bounds = array<i64: 1, 128, 128>}, {transform_indices = @transform_2, window_bounds = array<i64: 1, 1, 128>}, {transform_indices = @transform_3, window_bounds = array<i64: 1, 32, 128>}]} {
    %c0_i32 = arith.constant 0 : i32
    %0 = arith.cmpi eq, %arg3, %c0_i32 : i32
    %1 = arith.extui %0 : i1 to i32
    %c0_i32_0 = arith.constant 0 : i32
    %2 = arith.cmpi ne, %1, %c0_i32_0 : i32
    scf.if %2 {
      %cst_12 = arith.constant 0.000000e+00 : f32
      %14 = vector.broadcast %cst_12 : f32 to vector<32x128xf32>
      %c0_13 = arith.constant 0 : index
      %c0_14 = arith.constant 0 : index
      %15 = vector.load %arg8[%c0_13, %c0_14] : memref<32x128xf32, #tpu.memory_space<vmem>>, vector<32x128xf32>
      tpu.vector_store %arg8[%c0_13, %c0_14], %14 {strides = array<i32>} : memref<32x128xf32, #tpu.memory_space<vmem>>, vector<32x128xf32>,
    } else {
    }
    %c0 = arith.constant 0 : index
    %c0_1 = arith.constant 0 : index
    %3 = vector.load %arg8[%c0, %c0_1] : memref<32x128xf32, #tpu.memory_space<vmem>>, vector<32x128xf32>
    %c0_2 = arith.constant 0 : index
    %c0_3 = arith.constant 0 : index
    %c0_4 = arith.constant 0 : index
    %4 = vector.load %arg4[%c0_2, %c0_3, %c0_4] : memref<1x32x128xf32, #tpu.memory_space<vmem>>, vector<1x32x128xf32>
    %5 = vector.shape_cast %4 : vector<1x32x128xf32> to vector<32x128xf32>
    %c0_5 = arith.constant 0 : index
    %c0_6 = arith.constant 0 : index
    %c0_7 = arith.constant 0 : index
    %6 = vector.load %arg5[%c0_5, %c0_6, %c0_7] : memref<1x128x128xf32, #tpu.memory_space<vmem>>, vector<1x128x128xf32>
    %7 = vector.shape_cast %6 : vector<1x128x128xf32> to vector<128x128xf32>
    %cst = arith.constant dense<0.000000e+00> : vector<32x128xf32>
    %8 = tpu.matmul %5, %7, %cst {dimension_numbers = #tpu.dot_dimension_numbers<[1], [0], [0], [1], [0, 0, 1, 1], [], []>} : vector<32x128xf32>, vector<128x128xf32>, vector<32x128xf32> -> vector<32x128xf32>
    %9 = arith.addf %3, %8 : vector<32x128xf32>
    %c0_8 = arith.constant 0 : index
    %c0_9 = arith.constant 0 : index
    %10 = vector.load %arg8[%c0_8, %c0_9] : memref<32x128xf32, #tpu.memory_space<vmem>>, vector<32x128xf32>
    tpu.vector_store %arg8[%c0_8, %c0_9], %9 {strides = array<i32>} : memref<32x128xf32, #tpu.memory_space<vmem>>, vector<32x128xf32>,
    %c0_i32_10 = arith.constant 0 : i32
    %11 = arith.cmpi eq, %arg3, %c0_i32_10 : i32
    %12 = arith.extui %11 : i1 to i32
    %c0_i32_11 = arith.constant 0 : i32
    %13 = arith.cmpi ne, %12, %c0_i32_11 : i32
    scf.if %13 {
      %c0_12 = arith.constant 0 : index
      %c0_13 = arith.constant 0 : index
      %14 = vector.load %arg8[%c0_12, %c0_13] : memref<32x128xf32, #tpu.memory_space<vmem>>, vector<32x128xf32>
      %c0_14 = arith.constant 0 : index
      %c0_15 = arith.constant 0 : index
      %c0_16 = arith.constant 0 : index
      %15 = vector.load %arg6[%c0_14, %c0_15, %c0_16] : memref<1x1x128xf32, #tpu.memory_space<vmem>>, vector<1x1x128xf32>
      %16 = vector.shape_cast %15 : vector<1x1x128xf32> to vector<1x128xf32>
      %17 = vector.broadcast %16 : vector<1x128xf32> to vector<32x128xf32>
      %18 = arith.addf %14, %17 : vector<32x128xf32>
      %c0_17 = arith.constant 0 : index
      %c0_18 = arith.constant 0 : index
      %c0_19 = arith.constant 0 : index
      %19 = vector.load %arg7[%c0_17, %c0_18, %c0_19] : memref<1x32x128xf32, #tpu.memory_space<vmem>>, vector<1x32x128xf32>
      %20 = vector.shape_cast %19 : vector<1x32x128xf32> to vector<32x128xf32>
      %21 = vector.shape_cast %18 : vector<32x128xf32> to vector<1x32x128xf32>
      tpu.vector_store %arg7[%c0_17, %c0_18, %c0_19], %21 {strides = array<i32>} : memref<1x32x128xf32, #tpu.memory_space<vmem>>, vector<1x32x128xf32>,
    } else {
    }
    return
  }
  func.func @transform_0(%arg0: i32, %arg1: i32, %arg2: i32, %arg3: i32) -> (i32, i32, i32) {
    %c0_i32 = arith.constant 0 : i32
    return %arg0, %arg1, %arg3 : i32, i32, i32
  }
  func.func @transform_1(%arg0: i32, %arg1: i32, %arg2: i32, %arg3: i32) -> (i32, i32, i32) {
    %c0_i32 = arith.constant 0 : i32
    return %arg0, %arg3, %arg2 : i32, i32, i32
  }
  func.func @transform_2(%arg0: i32, %arg1: i32, %arg2: i32, %arg3: i32) -> (i32, i32, i32) {
    %c0_i32 = arith.constant 0 : i32
    %c0_i32_0 = arith.constant 0 : i32
    return %arg0, %c0_i32, %arg2 : i32, i32, i32
  }
  func.func @transform_3(%arg0: i32, %arg1: i32, %arg2: i32, %arg3: i32) -> (i32, i32, i32) {
    %c0_i32 = arith.constant 0 : i32
    return %arg0, %arg1, %arg2 : i32, i32, i32
  }
}

</mosaic_0001>

<bundles_post_ra>
// kernel: tpu_custom_call.1
= control target key start
LH: loop header
LB: loop body
LE: loop exit
PB: predicated region body
PF: predicated region fallthrough
CT: control target
= control target key end

     0   :  { %s1102_s0 = inlined_call_operand.hbm [shape: f32[2,32,128], index: 0, kind: input, shape index: {}]   ;;  %s1103_s1 = inlined_call_operand.hbm [shape: f32[2,128,128], index: 1, kind: input, shape index: {}]   ;;  %s1104_s2 = inlined_call_operand.hbm [shape: f32[2,1,128], index: 2, kind: input, shape index: {}]   ;;  %s1105_s3 = inlined_call_operand.hbm [shape: f32[2,32,128], index: 3, kind: output, shape index: {}]  }
   0x1   :  { %1111 = sst [smem:[#allocation18_spill]] %s1103_s1 }
   0x2   :  { %8 = vsyncpa [#allocation4], 0 }
   0x3   :  { %10 = vsyncpa [#allocation4 + $0x1], 0 }
   0x4   :  { %11 = vsyncpa [#allocation7], 0 }
   0x5   :  { %13 = vsyncpa [#allocation7 + $0x1], 0 }
   0x6   :  { %14 = vsyncpa [#allocation5], 0 }
   0x7   :  { %16 = vsyncpa [#allocation5 + $0x1], 0  ;;  %s910_s12 = smov 0   ;;  %s912_s13 = smov 0  }
   0x8   :  { %s914_s14 = smov 0   ;;  %s916_s15 = smov 0  }
   0x9   :  { %s918_s16 = smov 0   ;;  %s920_s17 = smov 0  }
   0xa LB: > { %1112 = sst [smem:[#allocation13_spill]] %s872_s14  ;;  %s941_s18 = sadd.s32 4294967295, %s884_s17   ;;  %s884_s17 = sphi %s920_s17, %s22_s17   ;;  %s880_s16 = sphi %s918_s16, %s1132_s16   ;;  %s876_s15 = sphi %s916_s15, %s1131_s15   ;;  %s872_s14 = sphi %s914_s14, %s1127_s14   ;;  %s868_s13 = sphi %s912_s13, %s1130_s13   ;;  %s864_s12 = sphi %s910_s12, %s1129_s12  }
   0xb   : > { %1113 = sst [smem:[#allocation14_spill]] %s884_s17  ;;  %s562_s19 = sadd.s32 4294967294, %s884_s17  }
   0xc   : > { %s48_s20 = sadd.s32 1, %s880_s16  ;;  %s59_s21 = sadd.s32 1, %s872_s14 }
   0xd   : > { %p50_p0 = scmp.ge.s32.totalorder %s48_s20, 2  ;;  %p66_p1 = scmp.ne.s32.totalorder %s872_s14, %s868_s13 }
   0xe   : > { %p67_p2 = scmp.eq.s32.totalorder %s884_s17, 0  ;;  %p72_p3 = scmp.ne.s32.totalorder %s868_s13, %s864_s12 }
   0xf   : > { %s1134_s20 = smov (%p50_p0, %s48_s20), 0  ;;  %p73_p5 = scmp.eq.s32.totalorder %s941_s18, 0 }
  0x10   : > { %1114 = sst [smem:[#allocation15_spill]] %s1134_s20  ;;  %p953_p4 = por %p67_p2, %p66_p1 }
  0x11   : > { %s52_s23 = ssub.s32 %s880_s16, %s1134_s20  ;;  %p158_p6 = scmp.eq.s32.totalorder %s941_s18, 1 }
  0x12   : > { %p57_p7 = scmp.eq.s32.totalorder %s52_s23, 0  ;;  %p961_p8 = por %p73_p5, %p72_p3 }
  0x13   : > { %p965_p9 = por %p158_p6, %p66_p1  ;;  %p164_p10 = scmp.eq.s32.totalorder %s562_s19, 1 }
  0x14   : > { %s970_s26 = scalar_select %p57_p7, %s872_s14, %s59_s21  }
  0x15   : > { %p972_p11 = por %p164_p10, %p72_p3  ;;  %p564_p12 = scmp.ge.s32.totalorder %s884_s17, 2 }
  0x16   : > { %1118 = sst [smem:[#allocation16_spill]] %s970_s26  ;;  %p653_p13 = scmp.lt.s32.totalorder %s884_s17, 2 }
  0x17   : > { %s1119_s27 = scalar_select %p972_p11, 1, 0 }
  0x18   : > { %s979_s28 = sand.u32 1, %s872_s14   ;;  %p983_p0 = pnand %p653_p13, %p953_p4 }
  0x19   : > { %1120 = sst [smem:[#allocation17_spill]] %s1119_s27  ;;  %s209_s30 = sand.u32 1, %s884_s17  }
  0x1a   : > { %s568_s4 = sshll.u32 %s979_s28, 7  ;;  %s581_s5 = sshll.u32 %s880_s16, 7 }
  0x1b   : > { %s213_s6 = scalar_lea.vmem [#allocation6], %s568_s4  ;;  %s1122_s1 = sld [smem:[#allocation18_spill]] }
  0x1c   : > { %s224_s7 = sshll.u32 %s213_s6, 4  ;;  %p571_p1 = scmp.ge.s32.totalorder %s884_s17, 1  ;;  %s225_s7 = int_to_ptr.vmem [resolvable:$true] %s224_s7 }
  0x1d   : > { %p250_p2 = scmp.lt.s32.totalorder %s884_s17, 3  ;;  %s210_s19 = scalar_lea.sflag [#allocation7], %s209_s30 }
  0x1e   : > { %s886_s21 = smov 128   ;;  %s887_s22 = smov 8  }
  0x1f   : > { %p997_p3 = pnand %p571_p1, %p250_p2  ;;  %s565_s4 = sshll.u32 %s979_s28, 5 }
  0x20   : > { %s185_s30 = scalar_lea.sflag [#allocation4], %s979_s28  ;;  %s241_s26 = scalar_lea.hbm %s1104_s2, %s880_s16 }
  0x21   : > { %s221_s10 = scalar_lea.hbm %s1122_s1, %s581_s5  ;;  %s580_s5 = sshll.u32 %s880_s16, 5 }
  0x22   : > { %s222_s11 = sshll.u32 %s221_s10, 4  ;;  %s196_s9 = scalar_lea.hbm %s1102_s0, %s580_s5  ;;  %s223_s11 = int_to_ptr.hbm [resolvable:$true] %s222_s11 }
  0x23   : > { %645 = dma.hbm_to_vmem [thread:$0]  (!%p983_p0), %s223_s11, 2048, %s225_s7, %s210_s19, %s886_s21, %s886_s21, %s887_s22  }
  0x24   : > { %s197_s10 = sshll.u32 %s196_s9, 4  ;;  %s188_s1 = scalar_lea.vmem [#allocation3], %s565_s4  ;;  %s198_s10 = int_to_ptr.hbm [resolvable:$true] %s197_s10 }
  0x25   : > { %s199_s20 = sshll.u32 %s188_s1, 4  ;;  %s243_s14 = sshll.u32 %s241_s26, 4  ;;  %s200_s20 = int_to_ptr.vmem [resolvable:$true] %s199_s20  ;;  %s244_s14 = int_to_ptr.hbm [resolvable:$true] %s243_s14 }
  0x26   : > { %642 = dma.hbm_to_vmem [thread:$0]  (!%p983_p0), %s198_s10, 512, %s200_s20, %s185_s30, %s886_s21, %s886_s21, %s887_s22  }
  0x27   : > { %s237_s17 = scalar_lea.vmem [#allocation8], %s979_s28  ;;  %254 = sbr.rel (%p997_p3) target bundleno = 219 (0xdb), region = 32 }
  0x28   : > { %s245_s27 = sshll.u32 %s237_s17, 4  ;;  %s1019_s1 = sand.u32 (!%p997_p3), 1, %s868_s13   ;;  %s246_s27 = int_to_ptr.vmem [resolvable:$true] %s245_s27 }
  0x29   : > { %648 = dma.hbm_to_vmem [thread:$0]  (!%p983_p0), %s244_s14, 16, %s246_s27, %s210_s19  }
  0x2a   : > { %s572_s20 = sshll.u32 (!%p997_p3), %s1019_s1, 5  ;;  %s257_s21 = scalar_lea.sflag (!%p997_p3), [#allocation4], %s1019_s1 }
  0x2b   : > { %s1025_s26 = scalar_lea.vmem (!%p997_p3), [#allocation3], %s572_s20 }
  0x2c   : > { %851 = dma.done.wait (%p961_p8), %s257_s21, 512  }
  0x2d   : > { %853 = vsyncadd (%p961_p8), %s257_s21, 4294966784  ;;  %s266_s14 = sand.u32 1, %s941_s18   ;;  %s573_s17 = sshll.u32 %s1019_s1, 7 }
  0x2e   : > { %s267_s27 = scalar_lea.sflag [#allocation7], %s266_s14  ;;  %s1033_s28 = scalar_lea.vmem [#allocation6], %s573_s17 }
  0x2f   : > { %855 = dma.done.wait (%p961_p8), %s267_s27, 2064  }
  0x30   : > { %857 = vsyncadd (%p961_p8), %s267_s27, 4294965232  ;;  %v346_v0 = vld [vmem:[%s1033_s28 + $0x78] sm:$0xff]  ;;  %v345_v1 = vld [vmem:[%s1033_s28 + $0x70] sm:$0xff]  ;;  %s279_s18 = scalar_lea.vmem [#allocation8], %s1019_s1  ;;  %s582_s24 = sshll.u32 %s876_s15, 5 }
  0x31   : > { %584 = vmatpush.msra.mxu2 %v346_v0  ;;  %585 = vmatpush.msra.mxu3 %v346_v0  ;;  %v344_v2 = vld [vmem:[%s1033_s28 + $0x68] sm:$0xff]  ;;  %v343_v3 = vld [vmem:[%s1033_s28 + $0x60] sm:$0xff]  ;;  %v342_v4 = vld [vmem:[%s1033_s28 + $0x58] sm:$0xff]  ;;  %s418_s22 = scalar_lea.hbm %s1105_s3, %s582_s24  ;;  %s311_s23 = scalar_lea.vmem [#allocation9], %s572_s20 }
  0x32   : > { %347 = vmatpush.msra.mxu0 %v346_v0  ;;  %583 = vmatpush.msra.mxu1 %v346_v0  ;;  %v341_v5 = vld [vmem:[%s1033_s28 + $0x50] sm:$0xff]  ;;  %v340_v6 = vld [vmem:[%s1033_s28 + $0x48] sm:$0xff]  ;;  %v339_v7 = vld [vmem:[%s1033_s28 + $0x40] sm:$0xff]  ;;  %s419_s4 = sshll.u32 %s311_s23, 4  ;;  %s421_s5 = sshll.u32 %s418_s22, 4  ;;  %s420_s4 = int_to_ptr.vmem [resolvable:$true] %s419_s4  ;;  %s422_s5 = int_to_ptr.hbm [resolvable:$true] %s421_s5 }
  0x33   : > { %587 = vmatpush.msra.mxu2 %v345_v1  ;;  %588 = vmatpush.msra.mxu3 %v345_v1  ;;  %v338_v8 = vld [vmem:[%s1033_s28 + $0x38] sm:$0xff]  ;;  %v337_v9 = vld [vmem:[%s1033_s28 + $0x30] sm:$0xff]  ;;  %v336_v10 = vld [vmem:[%s1033_s28 + $0x28] sm:$0xff]  ;;  %s404_s15 = scalar_lea.sflag [#allocation5], %s1019_s1  ;;  %s812_s6 = sshra.s32 %s422_s5, 4  ;;  %s813_s6 = int_to_ptr.hbm [resolvable:$true] %s812_s6 }
  0x34   : > { %348 = vmatpush.msra.mxu0 %v345_v1  ;;  %586 = vmatpush.msra.mxu1 %v345_v1  ;;  %v335_v11 = vld [vmem:[%s1033_s28 + $0x20] sm:$0xff]  ;;  %v334_v12 = vld [vmem:[%s1033_s28 + $0x18] sm:$0xff]  ;;  %v333_v13 = vld [vmem:[%s1033_s28 + $0x10] sm:$0xff]  ;;  %s814_s8 = scalar_lea.hbm %s813_s6, 32  ;;  %s818_s30 = scalar_lea.hbm %s1105_s3, 64 }
  0x35   : > { %590 = vmatpush.msra.mxu2 %v344_v2  ;;  %591 = vmatpush.msra.mxu3 %v344_v2  ;;  %v332_v14 = vld [vmem:[%s1033_s28 + $0x8] sm:$0xff]  ;;  %v331_v15 = vld [vmem:[%s1033_s28] sm:$0xff]  ;;  %v329_v16 = vld [vmem:[%s1025_s26 + $0x10] sm:$0xff]  ;;  %p815_p4 = scmp.ne.s32.totalorder %s813_s6, %s814_s8  ;;  %p819_p7 = scmp.lt.s32.totalorder %s813_s6, %s1105_s3 }
  0x36   : > { %349 = vmatpush.msra.mxu0 %v344_v2  ;;  %589 = vmatpush.msra.mxu1 %v344_v2  ;;  %v330_v17 = vld [vmem:[%s1025_s26 + $0x18] sm:$0xff]  ;;  %v327_v18 = vld [vmem:[%s1025_s26] sm:$0xff]  ;;  %v328_v19 = vld [vmem:[%s1025_s26 + $0x8] sm:$0xff]  ;;  %p820_p8 = scmp.lt.s32.totalorder %s818_s30, %s814_s8 }
  0x37   : > { %593 = vmatpush.msra.mxu2 %v343_v3  ;;  %594 = vmatpush.msra.mxu3 %v343_v3  ;;  %v707_v20 = vld [vmem:[%s279_s18] ss:$0 sm:$0xff]  ;;  %p816_p5 = pnand %p815_p4, %p965_p9 }
  0x38   : > { %350 = vmatpush.msra.mxu0 %v343_v3  ;;  %592 = vmatpush.msra.mxu1 %v343_v3  ;;  %p821_p10 = por %p820_p8, %p819_p7 }
  0x39   : > { %596 = vmatpush.msra.mxu2 %v342_v4  ;;  %597 = vmatpush.msra.mxu3 %v342_v4  ;;  %p817_p6 = pneg %p816_p5 }
  0x3a   : > { %351 = vmatpush.msra.mxu0 %v342_v4  ;;  %595 = vmatpush.msra.mxu1 %v342_v4 }
  0x3b   : > { %599 = vmatpush.msra.mxu2 %v341_v5  ;;  %600 = vmatpush.msra.mxu3 %v341_v5  ;;  %p822_p13 = pnand %p821_p10, %p817_p6 }
  0x3c   : > { %352 = vmatpush.msra.mxu0 %v341_v5  ;;  %598 = vmatpush.msra.mxu1 %v341_v5 }
  0x3d   : > { %602 = vmatpush.msra.mxu2 %v340_v6  ;;  %603 = vmatpush.msra.mxu3 %v340_v6 }
  0x3e   : > { %353 = vmatpush.msra.mxu0 %v340_v6  ;;  %601 = vmatpush.msra.mxu1 %v340_v6 }
  0x3f   : > { %605 = vmatpush.msra.mxu2 %v339_v7  ;;  %606 = vmatpush.msra.mxu3 %v339_v7 }
  0x40   : > { %354 = vmatpush.msra.mxu0 %v339_v7  ;;  %604 = vmatpush.msra.mxu1 %v339_v7 }
  0x41   : > { %608 = vmatpush.msra.mxu2 %v338_v8  ;;  %609 = vmatpush.msra.mxu3 %v338_v8 }
  0x42   : > { %355 = vmatpush.msra.mxu0 %v338_v8  ;;  %607 = vmatpush.msra.mxu1 %v338_v8 }
  0x43   : > { %611 = vmatpush.msra.mxu2 %v337_v9  ;;  %612 = vmatpush.msra.mxu3 %v337_v9 }
  0x44   : > { %356 = vmatpush.msra.mxu0 %v337_v9  ;;  %610 = vmatpush.msra.mxu1 %v337_v9 }
  0x45   : > { %614 = vmatpush.msra.mxu2 %v336_v10  ;;  %615 = vmatpush.msra.mxu3 %v336_v10 }
  0x46   : > { %357 = vmatpush.msra.mxu0 %v336_v10  ;;  %613 = vmatpush.msra.mxu1 %v336_v10 }
  0x47   : > { %617 = vmatpush.msra.mxu2 %v335_v11  ;;  %618 = vmatpush.msra.mxu3 %v335_v11 }
  0x48   : > { %358 = vmatpush.msra.mxu0 %v335_v11  ;;  %616 = vmatpush.msra.mxu1 %v335_v11 }
  0x49   : > { %620 = vmatpush.msra.mxu2 %v334_v12  ;;  %621 = vmatpush.msra.mxu3 %v334_v12 }
  0x4a   : > { %359 = vmatpush.msra.mxu0 %v334_v12  ;;  %619 = vmatpush.msra.mxu1 %v334_v12 }
  0x4b   : > { %623 = vmatpush.msra.mxu2 %v333_v13  ;;  %624 = vmatpush.msra.mxu3 %v333_v13 }
  0x4c   : > { %360 = vmatpush.msra.mxu0 %v333_v13  ;;  %622 = vmatpush.msra.mxu1 %v333_v13 }
  0x4d   : > { %626 = vmatpush.msra.mxu2 %v332_v14  ;;  %627 = vmatpush.msra.mxu3 %v332_v14 }
  0x4e   : > { %361 = vmatpush.msra.mxu0 %v332_v14  ;;  %625 = vmatpush.msra.mxu1 %v332_v14 }
  0x4f   : > { %629 = vmatpush.msra.mxu2 %v331_v15  ;;  %630 = vmatpush.msra.mxu3 %v331_v15 }
  0x50   : > { %369 = vmatmul.f32.vlgmr.msra.gmra.mxu2 %v329_v16  ;;  %372 = vmatmul.f32.vlgmr.msra.gmra.mxu3 %v330_v17 }
  0x51   : > { %362 = vmatpush.msra.mxu0 %v331_v15  ;;  %628 = vmatpush.msra.mxu1 %v331_v15 }
  0x52   : > { %363 = vmatmul.f32.vlgmr.msra.gmra.mxu0 %v327_v18  ;;  %366 = vmatmul.f32.vlgmr.msra.gmra.mxu1 %v328_v19 }
  0xcf   : > { %v364_v21 = vpop.f32.mrf.mxu0  ;;  %v367_v22 = vpop.f32.mrf.mxu1 }
  0xd0   : > { %v395_v23 = vadd.f32 %v707_v20, %v364_v21  ;;  %v396_v24 = vadd.f32 %v707_v20, %v367_v22 }
  0xd2   : > { %399 = vst [vmem:[%s311_s23] sm:$0xff] %v395_v23 }
  0xd3   : > { %400 = vst [vmem:[%s311_s23 + $0x8] sm:$0xff] %v396_v24  ;;  %v370_v25 = vpop.f32.mrf.mxu2  ;;  %v373_v26 = vpop.f32.mrf.mxu3 }
  0xd4   : > { %v397_v27 = vadd.f32 %v707_v20, %v370_v25  ;;  %v398_v28 = vadd.f32 %v707_v20, %v373_v26 }
  0xd6   : > { %401 = vst [vmem:[%s311_s23 + $0x10] sm:$0xff] %v397_v27 }
  0xd7   : > { %402 = vst [vmem:[%s311_s23 + $0x18] sm:$0xff] %v398_v28 }
  0xd8   : > { %825 = shalt.err (!%p822_p13)
}
  0xd9   : > { %s888_s1 = smov 128   ;;  %s889_s20 = smov 8  }
  0xda   : > { %637 = dma.vmem_to_hbm [thread:$0]  (%p965_p9), %s420_s4, 512, %s422_s5, %s404_s15, %s888_s1, %s888_s1, %s889_s20  }
  0xdb PF: > { %s1125_s26 = sld [smem:[#allocation14_spill]]  ;;  %s436_s14 = sand.u32 1, %s864_s12  }
  0xdc   : > { %p650_p0 = pnand %p564_p12, %p972_p11  ;;  %s437_s17 = scalar_lea.sflag [#allocation5], %s436_s14 }
  0xde   : > { %p651_p1 = pneg %p650_p0 }
  0xe0   : > { %859 = dma.done.wait (%p651_p1), %s437_s17, 512  }
  0xe1   : > { %861 = vsyncadd (%p651_p1), %s437_s17, 4294966784  ;;  %s22_s17 = sadd.s32 1, %s1125_s26   ;;  %s1126_s27 = sld [smem:[#allocation13_spill]] }
  0xe2   : > { %p19_p2 = scmp.ge.s32.totalorder %s22_s17, 4   ;;  %s1127_s14 = sld [smem:[#allocation16_spill]] }
  0xe3   : > { %s1128_s25 = sld [smem:[#allocation15_spill]]  ;;  %s1129_s12 = smov %s868_s13 }
  0xe4   : > { %s1131_s15 = smov %s880_s16 }
  0xe5   :  { %21 = sbr.rel (!%p19_p2) target bundleno = 10 (0xa), region = 109 }
  0xe7   : > { %s1130_s13 = smov %s1126_s27 }
  0xe9   : > { %s1132_s16 = smov %s1128_s25 }
  0xea   :  { %443 = vsyncpa [#allocation4], 1 }
  0xeb   :  { %445 = vsyncpa [#allocation4 + $0x1], 1 }
  0xec   :  { %446 = vsyncpa [#allocation7], 1 }
  0xed   :  { %448 = vsyncpa [#allocation7 + $0x1], 1 }
  0xee   :  { %449 = vsyncpa [#allocation5], 1 }
  0xef   :  { %451 = vsyncpa [#allocation5 + $0x1], 1 }

</bundles_post_ra>
